<compile_context>
chip_gen: v7x
topology: tpu7x:2x2x1
jax: 0.10.0
libtpu: 0.0.40
codegen_flags: <defaults>
</compile_context>

<pallas_src>
import functools

import jax
import jax.numpy as jnp
from jax.experimental import pallas as pl
from jax.experimental.pallas import tpu as pltpu


def autopad(k, p=None):
    if p is None:
        p = k // 2 if isinstance(k, int) else [x // 2 for x in k]
    return p


def _round_up(x, m):
    return (x + m - 1) // m * m


def _conv_bn_silu_kernel(x_ref, w_ref, b_ref, o_ref, acc_ref, *, kk, wp, tr):
    """One (batch, row-tile) grid step of fused conv + folded-BN + SiLU.

    x_ref:   (1, Lin, C1p)      f32  padded+flattened image of batch n (whole image)
    w_ref:   (kk*kk, C1p, C2p)  bf16 BN-scale-folded weights, one slab per tap
    b_ref:   (1, C2p)           f32  folded BN bias
    o_ref:   (1, TR, C2p)       f32  output row tile (lane-dense C2p)
    acc_ref: (TR, C2p)          f32  VMEM scratch accumulator
    """
    r = pl.program_id(1)
    row0 = pl.multiple_of(r * tr, tr)

    acc_ref[...] = jnp.zeros_like(acc_ref)

    # K*K taps -> K*K shifted matmuls accumulated in f32 on the MXU.
    for t in range(kk * kk):
        off = (t // kk) * wp + (t % kk)                 # static per-tap offset
        xs = x_ref[0, pl.ds(row0 + off, tr), :]         # (TR, C1p) f32
        acc_ref[...] += jnp.dot(xs.astype(jnp.bfloat16), w_ref[t],
                                preferred_element_type=jnp.float32)

    y = acc_ref[...] + b_ref[...]                       # folded BN bias
    o_ref[0] = (y * jax.nn.sigmoid(y)).astype(o_ref.dtype)   # SiLU


def conv_bn_silu(x_nchw, weight_oihw, gamma, beta, running_mean, running_var,
                 *, k, s=1, p=None, eps=1e-5, tr=512):
    """NCHW in/out. Conv2d(bias=False) + BatchNorm2d(eval) + SiLU in one pallas_call."""
    assert s == 1, "stride > 1 not implemented"
    pad = autopad(k, p)
    N, C1, H, W = x_nchw.shape
    C2 = weight_oihw.shape[0]
    Ho, Wo = H, W                       # stride 1, 'same' autopad
    Hp, Wp = H + 2 * pad, W + 2 * pad

    # --- tiling parameters -------------------------------------------------
    Lout = Ho * Wp                      # flattened output rows (incl. garbage cols)
    tr = min(tr, _round_up(Lout, 128))  # output rows per grid step
    assert tr >= 8 and tr % 8 == 0
    Lout_pad = _round_up(Lout, tr)
    num_r = Lout_pad // tr
    max_off = (k - 1) * Wp + (k - 1)
    Lin_pad = _round_up(Lout_pad + max_off, 8)
    C1p = _round_up(C1, 8)              # sublane-aligned contraction dim
    C2p = _round_up(C2, 128)            # lane-dense output channels

    # --- wrapper glue (XLA): BN fold, layout, padding ------------------------
    scale = (gamma / jnp.sqrt(running_var + eps)).astype(jnp.float32)        # (C2,)
    bias = (beta - running_mean * scale).astype(jnp.float32)                 # (C2,)
    bias_p = jnp.pad(bias.reshape(1, C2), ((0, 0), (0, C2p - C2)))

    w_folded = weight_oihw.astype(jnp.float32) * scale[:, None, None, None]  # (C2,C1,K,K)
    w_taps = jnp.transpose(w_folded, (2, 3, 1, 0)).reshape(k * k, C1, C2)    # (KK,C1,C2)
    w_taps = jnp.pad(w_taps, ((0, 0), (0, C1p - C1), (0, C2p - C2))).astype(jnp.bfloat16)

    x_p = jnp.pad(x_nchw.astype(jnp.float32),
                  ((0, 0), (0, 0), (pad, pad), (pad, pad)))                  # (N,C1,Hp,Wp)
    x_flat = jnp.transpose(x_p, (0, 2, 3, 1)).reshape(N, Hp * Wp, C1)        # (N,Hp*Wp,C1)
    x_flat = jnp.pad(x_flat, ((0, 0), (0, Lin_pad - Hp * Wp), (0, C1p - C1)))

    kernel = functools.partial(_conv_bn_silu_kernel, kk=k, wp=Wp, tr=tr)

    # --- explicit VMEM budget (double-buffered blocks + scratch) -------------
    def padded_bytes(shape, dtype):
        lead = 1
        for d in shape[:-2]:
            lead *= d
        return (lead * _round_up(shape[-2], 8) * _round_up(shape[-1], 128)
                * jnp.dtype(dtype).itemsize)

    vmem_need = (2 * (padded_bytes((1, Lin_pad, C1p), jnp.float32)
                      + padded_bytes((k * k, C1p, C2p), jnp.bfloat16)
                      + padded_bytes((1, C2p), jnp.float32)
                      + padded_bytes((1, tr, C2p), jnp.float32))
                 + padded_bytes((tr, C2p), jnp.float32))
    vmem_limit = int(min(max(2 * vmem_need, 8 * 2**20), 32 * 2**20))

    cost = pl.CostEstimate(
        flops=2 * N * Ho * Wo * k * k * C1 * C2,
        transcendentals=N * Ho * Wo * C2,
        bytes_accessed=int(x_flat.size * 4 + w_taps.size * 2 + bias_p.size * 4
                           + N * Lout_pad * C2p * 4),
    )

    out_flat = pl.pallas_call(
        kernel,
        out_shape=jax.ShapeDtypeStruct((N, Lout_pad, C2p), jnp.float32),
        grid_spec=pltpu.PrefetchScalarGridSpec(
            num_scalar_prefetch=0,
            grid=(N, num_r),
            in_specs=[
                # whole (flattened, padded) image of batch n; fetched once per n
                pl.BlockSpec((1, Lin_pad, C1p), lambda n, r: (n, 0, 0)),
                pl.BlockSpec((k * k, C1p, C2p), lambda n, r: (0, 0, 0)),
                pl.BlockSpec((1, C2p), lambda n, r: (0, 0)),
            ],
            out_specs=pl.BlockSpec((1, tr, C2p), lambda n, r: (n, r, 0)),
            scratch_shapes=[pltpu.VMEM((tr, C2p), jnp.float32)],
        ),
        compiler_params=pltpu.CompilerParams(
            dimension_semantics=("parallel", "parallel"),
            vmem_limit_bytes=vmem_limit,
        ),
        cost_estimate=cost,
    )(x_flat, w_taps, bias_p)

    # Drop padded channels, garbage columns (w >= Wo) and row padding; back to NCHW.
    out = out_flat[:, :Lout, :C2].reshape(N, Ho, Wp, C2)[:, :, :Wo, :]
    return jnp.transpose(out, (0, 3, 1, 2))


# ------------------------------ references ----------------------------------
def _reference_f32(x, w, gamma, beta, mean, var, *, k, s=1, p=None, eps=1e-5):
    pad = autopad(k, p)
    y = jax.lax.conv_general_dilated(
        x.astype(jnp.float32), w.astype(jnp.float32), (s, s),
        ((pad, pad), (pad, pad)), dimension_numbers=("NCHW", "OIHW", "NCHW"))
    scale = gamma / jnp.sqrt(var + eps)
    y = y * scale.reshape(1, -1, 1, 1) + (beta - mean * scale).reshape(1, -1, 1, 1)
    return y * jax.nn.sigmoid(y)


def _reference_bf16(x, w, gamma, beta, mean, var, *, k, s=1, p=None, eps=1e-5):
    # Mirrors the kernel numerics: BN scale folded into bf16 weights, bf16 x, f32 acc.
    pad = autopad(k, p)
    scale = gamma / jnp.sqrt(var + eps)
    wf = (w.astype(jnp.float32) * scale[:, None, None, None]).astype(jnp.bfloat16)
    y = jax.lax.conv_general_dilated(
        x.astype(jnp.bfloat16), wf, (s, s), ((pad, pad), (pad, pad)),
        dimension_numbers=("NCHW", "OIHW", "NCHW"),
        preferred_element_type=jnp.float32)
    y = y + (beta - mean * scale).reshape(1, -1, 1, 1)
    return y * jax.nn.sigmoid(y)


if __name__ == "__main__":
    # Conv(c1=4, c2=8, k=3, s=1) on a small deterministic input.
    N, C1, H, W = 2, 4, 16, 16
    C2, K = 8, 3

    key = jax.random.PRNGKey(0)
    kx, kw, kg, kb = jax.random.split(key, 4)

    x = jax.random.normal(kx, (N, C1, H, W), dtype=jnp.float32)
    weight = jax.random.normal(kw, (C2, C1, K, K), dtype=jnp.float32) * 0.1
    gamma = 1.0 + 0.1 * jax.random.normal(kg, (C2,), dtype=jnp.float32)
    beta = 0.1 * jax.random.normal(kb, (C2,), dtype=jnp.float32)
    running_mean = jnp.zeros((C2,), jnp.float32)
    running_var = jnp.ones((C2,), jnp.float32)

    # tr=128 -> grid = (N=2, row_tiles=3): exercises the tiled, pipelined path.
    out = conv_bn_silu(x, weight, gamma, beta, running_mean, running_var,
                       k=K, s=1, tr=128)
    out = jax.block_until_ready(out)
    assert out.shape == (N, C2, H, W), out.shape

    ref_bf16 = _reference_bf16(x, weight, gamma, beta, running_mean, running_var, k=K)
    ref_f32 = _reference_f32(x, weight, gamma, beta, running_mean, running_var, k=K)
    assert jnp.allclose(out, ref_bf16, atol=1e-4, rtol=1e-4), "mismatch vs bf16 reference"
    assert jnp.allclose(out, ref_f32, atol=5e-2, rtol=5e-2), "mismatch vs f32 module reference"

    print("KERNEL_OK")
</pallas_src>

<mosaic_0001>
module attributes {stable_mosaic.version = 11 : i64} {
  func.func @_conv_bn_silu_kernel(%arg0: i32, %arg1: i32, %arg2: memref<1x424x8xf32, #tpu.memory_space<vmem>>, %arg3: memref<9x8x128xbf16, #tpu.memory_space<vmem>>, %arg4: memref<1x128xf32, #tpu.memory_space<vmem>>, %arg5: memref<1x128x128xf32, #tpu.memory_space<vmem>>, %arg6: memref<128x128xf32, #tpu.memory_space<vmem>>) attributes {dimension_semantics = [#tpu.dimension_semantics<parallel>, #tpu.dimension_semantics<parallel>], iteration_bounds = array<i64: 2, 3>, scalar_prefetch = 0 : i64, scratch_operands = 1 : i64, tpu.core_type = #tpu.core_type<tc>, window_params = [{transform_indices = @transform_0, window_bounds = array<i64: 1, 424, 8>}, {pipeline_mode = #tpu.pipeline_mode<synchronous>, transform_indices = @transform_1, window_bounds = array<i64: 9, 8, 128>}, {pipeline_mode = #tpu.pipeline_mode<synchronous>, transform_indices = @transform_2, window_bounds = array<i64: 1, 128>}, {transform_indices = @transform_3, window_bounds = array<i64: 1, 128, 128>}]} {
    %c128_i32 = arith.constant 128 : i32
    %0 = arith.muli %arg1, %c128_i32 : i32
    %1 = tpu.assume_multiple %0, 128 : i32
    %cst = arith.constant 0.000000e+00 : f32
    %2 = vector.broadcast %cst : f32 to vector<128x128xf32>
    %c0 = arith.constant 0 : index
    %c0_0 = arith.constant 0 : index
    %3 = vector.load %arg6[%c0, %c0_0] : memref<128x128xf32, #tpu.memory_space<vmem>>, vector<128x128xf32>
    tpu.vector_store %arg6[%c0, %c0_0], %2 {strides = array<i32>} : memref<128x128xf32, #tpu.memory_space<vmem>>, vector<128x128xf32>,
    %c0_i32 = arith.constant 0 : i32
    %4 = arith.addi %1, %c0_i32 : i32
    %c0_1 = arith.constant 0 : index
    %5 = arith.index_cast %4 : i32 to index
    %c0_2 = arith.constant 0 : index
    %6 = vector.load %arg2[%c0_1, %5, %c0_2] : memref<1x424x8xf32, #tpu.memory_space<vmem>>, vector<1x128x8xf32>
    %7 = vector.shape_cast %6 : vector<1x128x8xf32> to vector<128x8xf32>
    %c0_3 = arith.constant 0 : index
    %c0_4 = arith.constant 0 : index
    %8 = vector.load %arg6[%c0_3, %c0_4] : memref<128x128xf32, #tpu.memory_space<vmem>>, vector<128x128xf32>
    %9 = arith.truncf %7 : vector<128x8xf32> to vector<128x8xbf16>
    %c0_5 = arith.constant 0 : index
    %c0_6 = arith.constant 0 : index
    %c0_7 = arith.constant 0 : index
    %10 = vector.load %arg3[%c0_5, %c0_6, %c0_7] : memref<9x8x128xbf16, #tpu.memory_space<vmem>>, vector<1x8x128xbf16>
    %11 = vector.shape_cast %10 : vector<1x8x128xbf16> to vector<8x128xbf16>
    %cst_8 = arith.constant dense<0.000000e+00> : vector<128x128xf32>
    %12 = tpu.matmul %9, %11, %cst_8 {dimension_numbers = #tpu.dot_dimension_numbers<[1], [0], [0], [1], [0, 0, 1, 1], [], []>} : vector<128x8xbf16>, vector<8x128xbf16>, vector<128x128xf32> -> vector<128x128xf32>
    %13 = arith.addf %8, %12 : vector<128x128xf32>
    %c0_9 = arith.constant 0 : index
    %c0_10 = arith.constant 0 : index
    %14 = vector.load %arg6[%c0_9, %c0_10] : memref<128x128xf32, #tpu.memory_space<vmem>>, vector<128x128xf32>
    tpu.vector_store %arg6[%c0_9, %c0_10], %13 {strides = array<i32>} : memref<128x128xf32, #tpu.memory_space<vmem>>, vector<128x128xf32>,
    %c1_i32 = arith.constant 1 : i32
    %15 = arith.addi %1, %c1_i32 : i32
    %c0_11 = arith.constant 0 : index
    %16 = arith.index_cast %15 : i32 to index
    %c0_12 = arith.constant 0 : index
    %17 = vector.load %arg2[%c0_11, %16, %c0_12] : memref<1x424x8xf32, #tpu.memory_space<vmem>>, vector<1x128x8xf32>
    %18 = vector.shape_cast %17 : vector<1x128x8xf32> to vector<128x8xf32>
    %c0_13 = arith.constant 0 : index
    %c0_14 = arith.constant 0 : index
    %19 = vector.load %arg6[%c0_13, %c0_14] : memref<128x128xf32, #tpu.memory_space<vmem>>, vector<128x128xf32>
    %20 = arith.truncf %18 : vector<128x8xf32> to vector<128x8xbf16>
    %c1 = arith.constant 1 : index
    %c0_15 = arith.constant 0 : index
    %c0_16 = arith.constant 0 : index
    %21 = vector.load %arg3[%c1, %c0_15, %c0_16] : memref<9x8x128xbf16, #tpu.memory_space<vmem>>, vector<1x8x128xbf16>
    %22 = vector.shape_cast %21 : vector<1x8x128xbf16> to vector<8x128xbf16>
    %cst_17 = arith.constant dense<0.000000e+00> : vector<128x128xf32>
    %23 = tpu.matmul %20, %22, %cst_17 {dimension_numbers = #tpu.dot_dimension_numbers<[1], [0], [0], [1], [0, 0, 1, 1], [], []>} : vector<128x8xbf16>, vector<8x128xbf16>, vector<128x128xf32> -> vector<128x128xf32>
    %24 = arith.addf %19, %23 : vector<128x128xf32>
    %c0_18 = arith.constant 0 : index
    %c0_19 = arith.constant 0 : index
    %25 = vector.load %arg6[%c0_18, %c0_19] : memref<128x128xf32, #tpu.memory_space<vmem>>, vector<128x128xf32>
    tpu.vector_store %arg6[%c0_18, %c0_19], %24 {strides = array<i32>} : memref<128x128xf32, #tpu.memory_space<vmem>>, vector<128x128xf32>,
    %c2_i32 = arith.constant 2 : i32
    %26 = arith.addi %1, %c2_i32 : i32
    %c0_20 = arith.constant 0 : index
    %27 = arith.index_cast %26 : i32 to index
    %c0_21 = arith.constant 0 : index
    %28 = vector.load %arg2[%c0_20, %27, %c0_21] : memref<1x424x8xf32, #tpu.memory_space<vmem>>, vector<1x128x8xf32>
    %29 = vector.shape_cast %28 : vector<1x128x8xf32> to vector<128x8xf32>
    %c0_22 = arith.constant 0 : index
    %c0_23 = arith.constant 0 : index
    %30 = vector.load %arg6[%c0_22, %c0_23] : memref<128x128xf32, #tpu.memory_space<vmem>>, vector<128x128xf32>
    %31 = arith.truncf %29 : vector<128x8xf32> to vector<128x8xbf16>
    %c2 = arith.constant 2 : index
    %c0_24 = arith.constant 0 : index
    %c0_25 = arith.constant 0 : index
    %32 = vector.load %arg3[%c2, %c0_24, %c0_25] : memref<9x8x128xbf16, #tpu.memory_space<vmem>>, vector<1x8x128xbf16>
    %33 = vector.shape_cast %32 : vector<1x8x128xbf16> to vector<8x128xbf16>
    %cst_26 = arith.constant dense<0.000000e+00> : vector<128x128xf32>
    %34 = tpu.matmul %31, %33, %cst_26 {dimension_numbers = #tpu.dot_dimension_numbers<[1], [0], [0], [1], [0, 0, 1, 1], [], []>} : vector<128x8xbf16>, vector<8x128xbf16>, vector<128x128xf32> -> vector<128x128xf32>
    %35 = arith.addf %30, %34 : vector<128x128xf32>
    %c0_27 = arith.constant 0 : index
    %c0_28 = arith.constant 0 : index
    %36 = vector.load %arg6[%c0_27, %c0_28] : memref<128x128xf32, #tpu.memory_space<vmem>>, vector<128x128xf32>
    tpu.vector_store %arg6[%c0_27, %c0_28], %35 {strides = array<i32>} : memref<128x128xf32, #tpu.memory_space<vmem>>, vector<128x128xf32>,
    %c18_i32 = arith.constant 18 : i32
    %37 = arith.addi %1, %c18_i32 : i32
    %c0_29 = arith.constant 0 : index
    %38 = arith.index_cast %37 : i32 to index
    %c0_30 = arith.constant 0 : index
    %39 = vector.load %arg2[%c0_29, %38, %c0_30] : memref<1x424x8xf32, #tpu.memory_space<vmem>>, vector<1x128x8xf32>
    %40 = vector.shape_cast %39 : vector<1x128x8xf32> to vector<128x8xf32>
    %c0_31 = arith.constant 0 : index
    %c0_32 = arith.constant 0 : index
    %41 = vector.load %arg6[%c0_31, %c0_32] : memref<128x128xf32, #tpu.memory_space<vmem>>, vector<128x128xf32>
    %42 = arith.truncf %40 : vector<128x8xf32> to vector<128x8xbf16>
    %c3 = arith.constant 3 : index
    %c0_33 = arith.constant 0 : index
    %c0_34 = arith.constant 0 : index
    %43 = vector.load %arg3[%c3, %c0_33, %c0_34] : memref<9x8x128xbf16, #tpu.memory_space<vmem>>, vector<1x8x128xbf16>
    %44 = vector.shape_cast %43 : vector<1x8x128xbf16> to vector<8x128xbf16>
    %cst_35 = arith.constant dense<0.000000e+00> : vector<128x128xf32>
    %45 = tpu.matmul %42, %44, %cst_35 {dimension_numbers = #tpu.dot_dimension_numbers<[1], [0], [0], [1], [0, 0, 1, 1], [], []>} : vector<128x8xbf16>, vector<8x128xbf16>, vector<128x128xf32> -> vector<128x128xf32>
    %46 = arith.addf %41, %45 : vector<128x128xf32>
    %c0_36 = arith.constant 0 : index
    %c0_37 = arith.constant 0 : index
    %47 = vector.load %arg6[%c0_36, %c0_37] : memref<128x128xf32, #tpu.memory_space<vmem>>, vector<128x128xf32>
    tpu.vector_store %arg6[%c0_36, %c0_37], %46 {strides = array<i32>} : memref<128x128xf32, #tpu.memory_space<vmem>>, vector<128x128xf32>,
    %c19_i32 = arith.constant 19 : i32
    %48 = arith.addi %1, %c19_i32 : i32
    %c0_38 = arith.constant 0 : index
    %49 = arith.index_cast %48 : i32 to index
    %c0_39 = arith.constant 0 : index
    %50 = vector.load %arg2[%c0_38, %49, %c0_39] : memref<1x424x8xf32, #tpu.memory_space<vmem>>, vector<1x128x8xf32>
    %51 = vector.shape_cast %50 : vector<1x128x8xf32> to vector<128x8xf32>
    %c0_40 = arith.constant 0 : index
    %c0_41 = arith.constant 0 : index
    %52 = vector.load %arg6[%c0_40, %c0_41] : memref<128x128xf32, #tpu.memory_space<vmem>>, vector<128x128xf32>
    %53 = arith.truncf %51 : vector<128x8xf32> to vector<128x8xbf16>
    %c4 = arith.constant 4 : index
    %c0_42 = arith.constant 0 : index
    %c0_43 = arith.constant 0 : index
    %54 = vector.load %arg3[%c4, %c0_42, %c0_43] : memref<9x8x128xbf16, #tpu.memory_space<vmem>>, vector<1x8x128xbf16>
    %55 = vector.shape_cast %54 : vector<1x8x128xbf16> to vector<8x128xbf16>
    %cst_44 = arith.constant dense<0.000000e+00> : vector<128x128xf32>
    %56 = tpu.matmul %53, %55, %cst_44 {dimension_numbers = #tpu.dot_dimension_numbers<[1], [0], [0], [1], [0, 0, 1, 1], [], []>} : vector<128x8xbf16>, vector<8x128xbf16>, vector<128x128xf32> -> vector<128x128xf32>
    %57 = arith.addf %52, %56 : vector<128x128xf32>
    %c0_45 = arith.constant 0 : index
    %c0_46 = arith.constant 0 : index
    %58 = vector.load %arg6[%c0_45, %c0_46] : memref<128x128xf32, #tpu.memory_space<vmem>>, vector<128x128xf32>
    tpu.vector_store %arg6[%c0_45, %c0_46], %57 {strides = array<i32>} : memref<128x128xf32, #tpu.memory_space<vmem>>, vector<128x128xf32>,
    %c20_i32 = arith.constant 20 : i32
    %59 = arith.addi %1, %c20_i32 : i32
    %c0_47 = arith.constant 0 : index
    %60 = arith.index_cast %59 : i32 to index
    %c0_48 = arith.constant 0 : index
    %61 = vector.load %arg2[%c0_47, %60, %c0_48] : memref<1x424x8xf32, #tpu.memory_space<vmem>>, vector<1x128x8xf32>
    %62 = vector.shape_cast %61 : vector<1x128x8xf32> to vector<128x8xf32>
    %c0_49 = arith.constant 0 : index
    %c0_50 = arith.constant 0 : index
    %63 = vector.load %arg6[%c0_49, %c0_50] : memref<128x128xf32, #tpu.memory_space<vmem>>, vector<128x128xf32>
    %64 = arith.truncf %62 : vector<128x8xf32> to vector<128x8xbf16>
    %c5 = arith.constant 5 : index
    %c0_51 = arith.constant 0 : index
    %c0_52 = arith.constant 0 : index
    %65 = vector.load %arg3[%c5, %c0_51, %c0_52] : memref<9x8x128xbf16, #tpu.memory_space<vmem>>, vector<1x8x128xbf16>
    %66 = vector.shape_cast %65 : vector<1x8x128xbf16> to vector<8x128xbf16>
    %cst_53 = arith.constant dense<0.000000e+00> : vector<128x128xf32>
    %67 = tpu.matmul %64, %66, %cst_53 {dimension_numbers = #tpu.dot_dimension_numbers<[1], [0], [0], [1], [0, 0, 1, 1], [], []>} : vector<128x8xbf16>, vector<8x128xbf16>, vector<128x128xf32> -> vector<128x128xf32>
    %68 = arith.addf %63, %67 : vector<128x128xf32>
    %c0_54 = arith.constant 0 : index
    %c0_55 = arith.constant 0 : index
    %69 = vector.load %arg6[%c0_54, %c0_55] : memref<128x128xf32, #tpu.memory_space<vmem>>, vector<128x128xf32>
    tpu.vector_store %arg6[%c0_54, %c0_55], %68 {strides = array<i32>} : memref<128x128xf32, #tpu.memory_space<vmem>>, vector<128x128xf32>,
    %c36_i32 = arith.constant 36 : i32
    %70 = arith.addi %1, %c36_i32 : i32
    %c0_56 = arith.constant 0 : index
    %71 = arith.index_cast %70 : i32 to index
    %c0_57 = arith.constant 0 : index
    %72 = vector.load %arg2[%c0_56, %71, %c0_57] : memref<1x424x8xf32, #tpu.memory_space<vmem>>, vector<1x128x8xf32>
    %73 = vector.shape_cast %72 : vector<1x128x8xf32> to vector<128x8xf32>
    %c0_58 = arith.constant 0 : index
    %c0_59 = arith.constant 0 : index
    %74 = vector.load %arg6[%c0_58, %c0_59] : memref<128x128xf32, #tpu.memory_space<vmem>>, vector<128x128xf32>
    %75 = arith.truncf %73 : vector<128x8xf32> to vector<128x8xbf16>
    %c6 = arith.constant 6 : index
    %c0_60 = arith.constant 0 : index
    %c0_61 = arith.constant 0 : index
    %76 = vector.load %arg3[%c6, %c0_60, %c0_61] : memref<9x8x128xbf16, #tpu.memory_space<vmem>>, vector<1x8x128xbf16>
    %77 = vector.shape_cast %76 : vector<1x8x128xbf16> to vector<8x128xbf16>
    %cst_62 = arith.constant dense<0.000000e+00> : vector<128x128xf32>
    %78 = tpu.matmul %75, %77, %cst_62 {dimension_numbers = #tpu.dot_dimension_numbers<[1], [0], [0], [1], [0, 0, 1, 1], [], []>} : vector<128x8xbf16>, vector<8x128xbf16>, vector<128x128xf32> -> vector<128x128xf32>
    %79 = arith.addf %74, %78 : vector<128x128xf32>
    %c0_63 = arith.constant 0 : index
    %c0_64 = arith.constant 0 : index
    %80 = vector.load %arg6[%c0_63, %c0_64] : memref<128x128xf32, #tpu.memory_space<vmem>>, vector<128x128xf32>
    tpu.vector_store %arg6[%c0_63, %c0_64], %79 {strides = array<i32>} : memref<128x128xf32, #tpu.memory_space<vmem>>, vector<128x128xf32>,
    %c37_i32 = arith.constant 37 : i32
    %81 = arith.addi %1, %c37_i32 : i32
    %c0_65 = arith.constant 0 : index
    %82 = arith.index_cast %81 : i32 to index
    %c0_66 = arith.constant 0 : index
    %83 = vector.load %arg2[%c0_65, %82, %c0_66] : memref<1x424x8xf32, #tpu.memory_space<vmem>>, vector<1x128x8xf32>
    %84 = vector.shape_cast %83 : vector<1x128x8xf32> to vector<128x8xf32>
    %c0_67 = arith.constant 0 : index
    %c0_68 = arith.constant 0 : index
    %85 = vector.load %arg6[%c0_67, %c0_68] : memref<128x128xf32, #tpu.memory_space<vmem>>, vector<128x128xf32>
    %86 = arith.truncf %84 : vector<128x8xf32> to vector<128x8xbf16>
    %c7 = arith.constant 7 : index
    %c0_69 = arith.constant 0 : index
    %c0_70 = arith.constant 0 : index
    %87 = vector.load %arg3[%c7, %c0_69, %c0_70] : memref<9x8x128xbf16, #tpu.memory_space<vmem>>, vector<1x8x128xbf16>
    %88 = vector.shape_cast %87 : vector<1x8x128xbf16> to vector<8x128xbf16>
    %cst_71 = arith.constant dense<0.000000e+00> : vector<128x128xf32>
    %89 = tpu.matmul %86, %88, %cst_71 {dimension_numbers = #tpu.dot_dimension_numbers<[1], [0], [0], [1], [0, 0, 1, 1], [], []>} : vector<128x8xbf16>, vector<8x128xbf16>, vector<128x128xf32> -> vector<128x128xf32>
    %90 = arith.addf %85, %89 : vector<128x128xf32>
    %c0_72 = arith.constant 0 : index
    %c0_73 = arith.constant 0 : index
    %91 = vector.load %arg6[%c0_72, %c0_73] : memref<128x128xf32, #tpu.memory_space<vmem>>, vector<128x128xf32>
    tpu.vector_store %arg6[%c0_72, %c0_73], %90 {strides = array<i32>} : memref<128x128xf32, #tpu.memory_space<vmem>>, vector<128x128xf32>,
    %c38_i32 = arith.constant 38 : i32
    %92 = arith.addi %1, %c38_i32 : i32
    %c0_74 = arith.constant 0 : index
    %93 = arith.index_cast %92 : i32 to index
    %c0_75 = arith.constant 0 : index
    %94 = vector.load %arg2[%c0_74, %93, %c0_75] : memref<1x424x8xf32, #tpu.memory_space<vmem>>, vector<1x128x8xf32>
    %95 = vector.shape_cast %94 : vector<1x128x8xf32> to vector<128x8xf32>
    %c0_76 = arith.constant 0 : index
    %c0_77 = arith.constant 0 : index
    %96 = vector.load %arg6[%c0_76, %c0_77] : memref<128x128xf32, #tpu.memory_space<vmem>>, vector<128x128xf32>
    %97 = arith.truncf %95 : vector<128x8xf32> to vector<128x8xbf16>
    %c8 = arith.constant 8 : index
    %c0_78 = arith.constant 0 : index
    %c0_79 = arith.constant 0 : index
    %98 = vector.load %arg3[%c8, %c0_78, %c0_79] : memref<9x8x128xbf16, #tpu.memory_space<vmem>>, vector<1x8x128xbf16>
    %99 = vector.shape_cast %98 : vector<1x8x128xbf16> to vector<8x128xbf16>
    %cst_80 = arith.constant dense<0.000000e+00> : vector<128x128xf32>
    %100 = tpu.matmul %97, %99, %cst_80 {dimension_numbers = #tpu.dot_dimension_numbers<[1], [0], [0], [1], [0, 0, 1, 1], [], []>} : vector<128x8xbf16>, vector<8x128xbf16>, vector<128x128xf32> -> vector<128x128xf32>
    %101 = arith.addf %96, %100 : vector<128x128xf32>
    %c0_81 = arith.constant 0 : index
    %c0_82 = arith.constant 0 : index
    %102 = vector.load %arg6[%c0_81, %c0_82] : memref<128x128xf32, #tpu.memory_space<vmem>>, vector<128x128xf32>
    tpu.vector_store %arg6[%c0_81, %c0_82], %101 {strides = array<i32>} : memref<128x128xf32, #tpu.memory_space<vmem>>, vector<128x128xf32>,
    %c0_83 = arith.constant 0 : index
    %c0_84 = arith.constant 0 : index
    %103 = vector.load %arg6[%c0_83, %c0_84] : memref<128x128xf32, #tpu.memory_space<vmem>>, vector<128x128xf32>
    %c0_85 = arith.constant 0 : index
    %c0_86 = arith.constant 0 : index
    %104 = vector.load %arg4[%c0_85, %c0_86] : memref<1x128xf32, #tpu.memory_space<vmem>>, vector<1x128xf32>
    %105 = vector.broadcast %104 : vector<1x128xf32> to vector<128x128xf32>
    %106 = arith.addf %103, %105 : vector<128x128xf32>
    %107 = arith.negf %106 : vector<128x128xf32>
    %108 = math.exp %107 : vector<128x128xf32>
    %cst_87 = arith.constant 1.000000e+00 : f32
    %109 = vector.broadcast %cst_87 : f32 to vector<128x128xf32>
    %110 = arith.addf %109, %108 : vector<128x128xf32>
    %111 = arith.divf %109, %110 : vector<128x128xf32>
    %112 = arith.mulf %106, %111 : vector<128x128xf32>
    %c0_88 = arith.constant 0 : index
    %c0_89 = arith.constant 0 : index
    %c0_90 = arith.constant 0 : index
    %113 = vector.load %arg5[%c0_88, %c0_89, %c0_90] : memref<1x128x128xf32, #tpu.memory_space<vmem>>, vector<1x128x128xf32>
    %114 = vector.shape_cast %113 : vector<1x128x128xf32> to vector<128x128xf32>
    %115 = vector.shape_cast %112 : vector<128x128xf32> to vector<1x128x128xf32>
    tpu.vector_store %arg5[%c0_88, %c0_89, %c0_90], %115 {strides = array<i32>} : memref<1x128x128xf32, #tpu.memory_space<vmem>>, vector<1x128x128xf32>,
    return
  }
  func.func @transform_0(%arg0: i32, %arg1: i32) -> (i32, i32, i32) {
    %c0_i32 = arith.constant 0 : i32
    %c0_i32_0 = arith.constant 0 : i32
    %c0_i32_1 = arith.constant 0 : i32
    return %arg0, %c0_i32, %c0_i32_0 : i32, i32, i32
  }
  func.func @transform_1(%arg0: i32, %arg1: i32) -> (i32, i32, i32) {
    %c0_i32 = arith.constant 0 : i32
    %c0_i32_0 = arith.constant 0 : i32
    %c0_i32_1 = arith.constant 0 : i32
    %c0_i32_2 = arith.constant 0 : i32
    return %c0_i32, %c0_i32_0, %c0_i32_1 : i32, i32, i32
  }
  func.func @transform_2(%arg0: i32, %arg1: i32) -> (i32, i32) {
    %c0_i32 = arith.constant 0 : i32
    %c0_i32_0 = arith.constant 0 : i32
    %c0_i32_1 = arith.constant 0 : i32
    return %c0_i32, %c0_i32_0 : i32, i32
  }
  func.func @transform_3(%arg0: i32, %arg1: i32) -> (i32, i32, i32) {
    %c0_i32 = arith.constant 0 : i32
    %c0_i32_0 = arith.constant 0 : i32
    return %arg0, %arg1, %c0_i32 : i32, i32, i32
  }
}

</mosaic_0001>

<bundles_post_ra>
// kernel: tpu_custom_call.1
= control target key start
LH: loop header
LB: loop body
LE: loop exit
PB: predicated region body
PF: predicated region fallthrough
CT: control target
= control target key end

     0   :  { %8 = vsyncpa [#allocation4], 0  ;;  %s3674_s0 = inlined_call_operand.vmem [shape: f32[2,424,8], index: 0, kind: input, shape index: {}]   ;;  %s3675_s1 = inlined_call_operand.vmem [shape: bf16[9,8,128], index: 1, kind: input, shape index: {}]   ;;  %s3676_s2 = inlined_call_operand.vmem [shape: f32[1,128], index: 2, kind: input, shape index: {}]   ;;  %s3677_s3 = inlined_call_operand.hbm [shape: f32[2,384,128], index: 3, kind: output, shape index: {}]  }
   0x1   :  { %10 = vsyncpa [#allocation4 + $0x1], 0  ;;  %s3174_s12 = smov 0   ;;  %s3176_s13 = smov 0  }
   0x2   :  { %s3178_s14 = smov 0   ;;  %s3180_s15 = smov 0  }
   0x3   :  { %s3182_s16 = smov 0   ;;  %s3184_s17 = smov 0  }
   0x4   :  { %s3186_s18 = smov 0   ;;  %s3188_s19 = smov 0  }
   0x5 LB: > { %s2287_s20 = sadd.s32 4294967295, %s3149_s19   ;;  %s2288_s21 = sadd.s32 4294967294, %s3149_s19   ;;  %s3149_s19 = sphi %s3188_s19, %s16_s19   ;;  %s3145_s18 = sphi %s3186_s18, %s3686_s18   ;;  %s3141_s17 = sphi %s3184_s17, %s3685_s17   ;;  %s3137_s16 = sphi %s3182_s16, %s3684_s16   ;;  %s3133_s15 = sphi %s3180_s15, %s3683_s15   ;;  %s3129_s14 = sphi %s3178_s14, %s3682_s14   ;;  %s3125_s13 = sphi %s3176_s13, %s3681_s13   ;;  %s3121_s12 = sphi %s3174_s12, %s3680_s12  }
   0x6   : > { %s25_s22 = sadd.s32 1, %s3141_s17  ;;  %s28_s23 = sadd.s32 1, %s3145_s18 }
   0x7   : > { %p26_p0 = scmp.ge.s32.totalorder %s25_s22, 3  ;;  %p115_p1 = scmp.ne.s32.totalorder %s3129_s14, %s3125_s13 }
   0x8   : > { %p116_p2 = scmp.eq.s32.totalorder %s2287_s20, 5  ;;  %p121_p5 = scmp.ne.s32.totalorder %s3125_s13, %s3121_s12 }
   0x9   : > { %s3688_s22 = smov (%p26_p0, %s25_s22), 0  ;;  %s3690_s23 = smov (!%p26_p0, %s28_s23), %s3145_s18 }
   0xa   : > { %s101_s24 = ssub.s32 %s3141_s17, %s3688_s22  ;;  %p3225_p3 = por %p116_p2, %p115_p1 }
   0xb   : > { %p30_p4 = scmp.ge.s32.totalorder %s3690_s23, 2  ;;  %p122_p6 = scmp.eq.s32.totalorder %s2288_s21, 5 }
   0xc   : > { %p2291_p7 = scmp.ge.s32.totalorder %s3149_s19, 1  ;;  %p154_p9 = scmp.lt.s32.totalorder %s3149_s19, 7 }
   0xd   : > { %s3692_s23 = smov (%p30_p4, %s3690_s23), 0  ;;  %p3234_p8 = por %p122_p6, %p121_p5 }
   0xe   : > { %s100_s27 = ssub.s32 %s3145_s18, %s3692_s23  ;;  %s105_s28 = sadd.s32 1, %s3129_s14 }
   0xf   : > { %s102_s29 = sor.u32 %s101_s24, %s100_s27  ;;  %p155_p10 = pnand %p2291_p7, %p154_p9 }
  0x10   : > { %p103_p11 = scmp.eq.s32.totalorder %s102_s29, 0  ;;  %v243_v0 = vld [vmem:[%s3675_s1] sm:$0xf] (!%p155_p10)  ;;  %vm269_vm0 = vcmask (!%p155_p10), 1043456   ;;  %v3251_v1 = vld [vmem:[%s3675_s1 + $0x10] sm:$0xf] (!%p155_p10) }
  0x11   : > { %158 = sbr.rel (%p155_p10) target bundleno = 435 (0x1b3), region = 32  ;;  %p178_p12 = scmp.lt.s32.totalorder (!%p155_p10), %s3137_s16, 1  ;;  %2906 = vmatprep.subr.msk.bf16.mxu1 (!%p155_p10), %vm269_vm0, %v243_v0  ;;  %2910 = vmatprep.subr.msk.bf16.mxu0 (!%p155_p10), %vm269_vm0, %v3251_v1  ;;  %v271_v2 = vsel (!%p155_p10), %vm269_vm0, %v243_v0, 0  ;;  %v3260_v3 = vsel (!%p155_p10), %vm269_vm0, %v3251_v1, 0  ;;  %v2320_v4 = vld [vmem:[%s3675_s1 + $0x4] sm:$0xf] (!%p155_p10) }
  0x12   : > { %s3243_s30 = scalar_select %p103_p11, %s3129_s14, %s105_s28  }
  0x13   : > { %2615 = vmatpush3.bf16.msra.mxu1 (!%p155_p10), %v271_v2  ;;  %2687 = vmatpush3.bf16.msra.mxu0 (!%p155_p10), %v3260_v3  ;;  %v2424_v5 = vld [vmem:[%s3675_s1 + $0x14] sm:$0xf] (!%p155_p10)  ;;  %s2294_s24 = sshll.u32 (!%p155_p10), %s3133_s15, 7  ;;  %vm244_vm1 = vcmask (!%p155_p10), 64512   ;;  %v471_v15 = vsel (!%p155_p10), %vm269_vm0, %v2320_v4, 0  ;;  %s2917_s6 = smul.u32 (!%p155_p10), 48, %s3137_s16 }
  0x14   : > { %2907 = vmatprep.subr.msk.bf16.mxu1 (!%p155_p10), %vm269_vm0, %v2320_v4  ;;  %2912 = vmatprep.subr.msk.bf16.mxu0 (!%p155_p10), %vm269_vm0, %v2424_v5  ;;  %v1271_v20 = vsel (!%p155_p10), %vm269_vm0, %v2424_v5, 0  ;;  %v2450_v26 = vld [vmem:[%s3675_s1 + $0x18] sm:$0xf] (!%p155_p10)  ;;  %v3301_v27 = vld [vmem:[%s3675_s1 + $0x8] sm:$0xf] (!%p155_p10)  ;;  %s2529_s7 = sshll.u32 (!%p155_p10), %s3133_s15, 4 }
  0x15   : > { %v1471_v52 = vsel (!%p155_p10), %vm269_vm0, %v2450_v26, 0  ;;  %v2476_v53 = vld [vmem:[%s3675_s1 + $0x1c] sm:$0xf] (!%p155_p10)  ;;  %s2182_s8 = sadd.s32 (!%p155_p10), %s2917_s6, %s2529_s7 }
  0x18   : > { %s179_s10 = scalar_select %p178_p12, %s3137_s16, 1 }
  0x19   : > { %s2530_s16 = sshll.u32 %s2182_s8, 7 }
  0x1a   : > { %s2916_s21 = smul.u32 424, %s179_s10  ;;  %s3612_s11 = scalar_lea.hbm %s3677_s3, %s2530_s16 }
  0x1c   : > { %s182_s29 = scalar_lea.vmem %s3674_s0, %s2916_s21 }
  0x1d   : > { %s3276_s4 = scalar_lea.vmem %s182_s29, %s2294_s24  ;;  %s175_s29 = sand.u32 1, %s3125_s13  }
  0x1e   : > { %v203_v6 = vld [vmem:[%s3276_s4] sm:$0xff]  ;;  %v204_v7 = vld [vmem:[%s3276_s4 + $0x8] sm:$0xff]  ;;  %v2382_v8 = vld [vmem:[%s3276_s4 + $0x13] sm:$0xff]  ;;  %s3622_s20 = scalar_lea.sflag [#allocation4], %s175_s29  ;;  %s3151_s24 = smov [#allocation3]  }
  0x1f   : > { %v235_v9 = vpack.c.bf16 %v204_v7, %v203_v6  ;;  %v2383_v10 = vld [vmem:[%s3276_s4 + $0x1b] sm:$0xff]  ;;  %v205_v11 = vld [vmem:[%s3276_s4 + $0x10] sm:$0xff]  ;;  %v2384_v16 = vld [vmem:[%s3276_s4 + $0x23] sm:$0xff]  ;;  %s3059_s27 = sshll.u32 %s3151_s24, 4  ;;  %s3060_s27 = int_to_ptr.vmem [resolvable:$false] %s3059_s27 }
  0x20   : > { %v206_v12 = vld [vmem:[%s3276_s4 + $0x18] sm:$0xff]  ;;  %v1036_v13 = vpack.c.bf16 %v2383_v10, %v2382_v8  ;;  %v2385_v17 = vld [vmem:[%s3276_s4 + $0x2b] sm:$0xff]  ;;  %v207_v18 = vld [vmem:[%s3276_s4 + $0x20] sm:$0xff]  ;;  %s3061_s28 = scalar_lea.vmem %s3060_s27, 4096 }
  0x21   : > { %v236_v14 = vpack.c.bf16 %v206_v12, %v205_v11  ;;  %2616 = vmatprep.mubr.msk.bf16.mxu1 %vm244_vm1, %v235_v9  ;;  %v1037_v19 = vpack.c.bf16 %v2385_v17, %v2384_v16  ;;  %v208_v21 = vld [vmem:[%s3276_s4 + $0x28] sm:$0xff]  ;;  %v2386_v22 = vld [vmem:[%s3276_s4 + $0x33] sm:$0xff]  ;;  %v2387_v23 = vld [vmem:[%s3276_s4 + $0x3b] sm:$0xff] }
  0x22   : > { %2688 = vmatprep.mubr.msk.bf16.mxu0 %vm244_vm1, %v1036_v13  ;;  %v237_v24 = vpack.c.bf16 %v208_v21, %v207_v18  ;;  %v1038_v25 = vpack.c.bf16 %v2387_v23, %v2386_v22  ;;  %v209_v28 = vld [vmem:[%s3276_s4 + $0x30] sm:$0xff]  ;;  %v210_v29 = vld [vmem:[%s3276_s4 + $0x38] sm:$0xff]  ;;  %v2388_v30 = vld [vmem:[%s3276_s4 + $0x43] sm:$0xff] }
  0x23   : > { %2617 = vmatmul.mubr.msk.bf16.vlgmr.msra.gmra.mrb[0].mxu1 %vm244_vm1, %v236_v14  ;;  %2689 = vmatmul.mubr.msk.bf16.vlgmr.msra.gmra.mrb[0].mxu0 %vm244_vm1, %v1037_v19  ;;  %v2389_v31 = vld [vmem:[%s3276_s4 + $0x4b] sm:$0xff]  ;;  %v211_v32 = vld [vmem:[%s3276_s4 + $0x40] sm:$0xff]  ;;  %v2408_v34 = vld [vmem:[%s3276_s4 + $0x14] sm:$0xff]  ;;  %v238_v36 = vpack.c.bf16 %v210_v29, %v209_v28  ;;  %v671_v14 = vsel %vm269_vm0, %v3301_v27, 0 }
  0x24   : > { %2633 = vmatpush3.bf16.msra.mxu1 %v471_v15  ;;  %2705 = vmatpush3.bf16.msra.mxu0 %v1271_v20  ;;  %v212_v33 = vld [vmem:[%s3276_s4 + $0x48] sm:$0xff]  ;;  %v2409_v35 = vld [vmem:[%s3276_s4 + $0x1c] sm:$0xff]  ;;  %v1039_v37 = vpack.c.bf16 %v2389_v31, %v2388_v30  ;;  %v213_v40 = vld [vmem:[%s3276_s4 + $0x50] sm:$0xff] }
  0x25   : > { %2620 = vmatprep.mubr.msk.bf16.mxu1 %vm244_vm1, %v237_v24  ;;  %2692 = vmatprep.mubr.msk.bf16.mxu0 %vm244_vm1, %v1038_v25  ;;  %v239_v38 = vpack.c.bf16 %v212_v33, %v211_v32  ;;  %v1236_v39 = vpack.c.bf16 %v2409_v35, %v2408_v34  ;;  %v214_v41 = vld [vmem:[%s3276_s4 + $0x58] sm:$0xff]  ;;  %v2410_v42 = vld [vmem:[%s3276_s4 + $0x24] sm:$0xff]  ;;  %v2411_v43 = vld [vmem:[%s3276_s4 + $0x2c] sm:$0xff]  ;;  %v1671_v33 = vsel %vm269_vm0, %v2476_v53, 0 }
  0x26   : > { %2913 = vmatprep.subr.msk.bf16.mxu0 %vm269_vm0, %v2450_v26  ;;  %2908 = vmatprep.subr.msk.bf16.mxu1 %vm269_vm0, %v3301_v27  ;;  %v215_v44 = vld [vmem:[%s3276_s4 + $0x60] sm:$0xff]  ;;  %v216_v45 = vld [vmem:[%s3276_s4 + $0x68] sm:$0xff]  ;;  %v2412_v46 = vld [vmem:[%s3276_s4 + $0x34] sm:$0xff]  ;;  %v240_v48 = vpack.c.bf16 %v214_v41, %v213_v40  ;;  %v1237_v49 = vpack.c.bf16 %v2411_v43, %v2410_v42 }
  0x27   : > { %v2413_v47 = vld [vmem:[%s3276_s4 + $0x3c] sm:$0xff]  ;;  %v241_v50 = vpack.c.bf16 %v216_v45, %v215_v44  ;;  %v217_v54 = vld [vmem:[%s3276_s4 + $0x70] sm:$0xff]  ;;  %v2414_v56 = vld [vmem:[%s3276_s4 + $0x44] sm:$0xff] }
  0x28   : > { %v3329_v51 = vpack.c.bf16 %v2413_v47, %v2412_v46  ;;  %v218_v55 = vld [vmem:[%s3276_s4 + $0x78] sm:$0xff]  ;;  %v2415_v57 = vld [vmem:[%s3276_s4 + $0x4c] sm:$0xff]  ;;  %v2304_v58 = vld [vmem:[%s3276_s4 + $0x1] sm:$0xff] }
  0x29   : > { %v2305_v59 = vld [vmem:[%s3276_s4 + $0x9] sm:$0xff]  ;;  %v2416_v60 = vld [vmem:[%s3276_s4 + $0x54] sm:$0xff]  ;;  %v2417_v61 = vld [vmem:[%s3276_s4 + $0x5c] sm:$0xff]  ;;  %v242_v62 = vpack.c.bf16 %v218_v55, %v217_v54  ;;  %v1239_v63 = vpack.c.bf16 %v2415_v57, %v2414_v56 }
  0x2a   : > { %v436_v0 = vpack.c.bf16 %v2305_v59, %v2304_v58  ;;  %v1240_v2 = vpack.c.bf16 %v2417_v61, %v2416_v60  ;;  %v2306_v4 = vld [vmem:[%s3276_s4 + $0x11] sm:$0xff]  ;;  %v2307_v5 = vld [vmem:[%s3276_s4 + $0x19] sm:$0xff]  ;;  %v2418_v6 = vld [vmem:[%s3276_s4 + $0x64] sm:$0xff] }
  0x2b   : > { %2621 = vmatmul.mubr.msk.bf16.gmra.mrb[4].mxu1 %vm244_vm1, %v238_v36  ;;  %2693 = vmatmul.mubr.msk.bf16.gmra.mrb[4].mxu0 %vm244_vm1, %v1039_v37  ;;  %v2419_v7 = vld [vmem:[%s3276_s4 + $0x6c] sm:$0xff]  ;;  %v2308_v8 = vld [vmem:[%s3276_s4 + $0x21] sm:$0xff]  ;;  %v2420_v10 = vld [vmem:[%s3276_s4 + $0x74] sm:$0xff]  ;;  %v437_v12 = vpack.c.bf16 %v2307_v5, %v2306_v4 }
  0x2c   : > { %2624 = vmatprep.mubr.msk.bf16.mxu1 %vm244_vm1, %v239_v38  ;;  %2706 = vmatprep.mubr.msk.bf16.mxu0 %vm244_vm1, %v1236_v39  ;;  %v2309_v9 = vld [vmem:[%s3276_s4 + $0x29] sm:$0xff]  ;;  %v2421_v11 = vld [vmem:[%s3276_s4 + $0x7c] sm:$0xff]  ;;  %v1241_v13 = vpack.c.bf16 %v2419_v7, %v2418_v6  ;;  %v2310_v18 = vld [vmem:[%s3276_s4 + $0x31] sm:$0xff] }
  0x2d   : > { %v438_v15 = vpack.c.bf16 %v2309_v9, %v2308_v8  ;;  %v1242_v16 = vpack.c.bf16 %v2421_v11, %v2420_v10  ;;  %v2372_v17 = vld [vmem:[%s3675_s1 + $0xc] sm:$0xf]  ;;  %v2311_v19 = vld [vmem:[%s3276_s4 + $0x39] sm:$0xff]  ;;  %v2422_v20 = vld [vmem:[%s3276_s4 + $0x84] sm:$0xff] }
  0x2e   : > { %v2423_v21 = vld [vmem:[%s3276_s4 + $0x8c] sm:$0xff]  ;;  %v2312_v22 = vld [vmem:[%s3276_s4 + $0x41] sm:$0xff]  ;;  %v439_v24 = vpack.c.bf16 %v2311_v19, %v2310_v18  ;;  %v2315_v28 = vld [vmem:[%s3276_s4 + $0x59] sm:$0xff]  ;;  %v871_v46 = vsel %vm269_vm0, %v2372_v17, 0 }
  0x2f   : > { %v2313_v23 = vld [vmem:[%s3276_s4 + $0x49] sm:$0xff]  ;;  %v1243_v25 = vpack.c.bf16 %v2423_v21, %v2422_v20  ;;  %v2314_v27 = vld [vmem:[%s3276_s4 + $0x51] sm:$0xff]  ;;  %v2316_v29 = vld [vmem:[%s3276_s4 + $0x61] sm:$0xff] }
  0x30   : > { %v440_v26 = vpack.c.bf16 %v2313_v23, %v2312_v22  ;;  %v2317_v30 = vld [vmem:[%s3276_s4 + $0x69] sm:$0xff]  ;;  %v441_v31 = vpack.c.bf16 %v2315_v28, %v2314_v27  ;;  %v2502_v34 = vld [vmem:[%s3675_s1 + $0x20] sm:$0xf]  ;;  %v2318_v35 = vld [vmem:[%s3276_s4 + $0x71] sm:$0xff] }
  0x31   : > { %v442_v32 = vpack.c.bf16 %v2317_v30, %v2316_v29  ;;  %v2319_v36 = vld [vmem:[%s3276_s4 + $0x79] sm:$0xff]  ;;  %v2330_v37 = vld [vmem:[%s3276_s4 + $0x2] sm:$0xff]  ;;  %v2331_v38 = vld [vmem:[%s3276_s4 + $0xa] sm:$0xff]  ;;  %v1871_v9 = vsel %vm269_vm0, %v2502_v34, 0 }
  0x32   : > { %v443_v39 = vpack.c.bf16 %v2319_v36, %v2318_v35  ;;  %v636_v40 = vpack.c.bf16 %v2331_v38, %v2330_v37  ;;  %v2332_v41 = vld [vmem:[%s3276_s4 + $0x12] sm:$0xff]  ;;  %v2333_v42 = vld [vmem:[%s3276_s4 + $0x1a] sm:$0xff]  ;;  %v2334_v43 = vld [vmem:[%s3276_s4 + $0x22] sm:$0xff] }
  0x33   : > { %2625 = vmatmul.mubr.msk.bf16.gmra.mrb[8].mxu1 %vm244_vm1, %v240_v48  ;;  %2707 = vmatmul.mubr.msk.bf16.vlgmr.msra.gmra.mrb[0].mxu0 %vm244_vm1, %v1237_v49  ;;  %v2335_v44 = vld [vmem:[%s3276_s4 + $0x2a] sm:$0xff]  ;;  %v637_v45 = vpack.c.bf16 %v2333_v42, %v2332_v41  ;;  %v2336_v48 = vld [vmem:[%s3276_s4 + $0x32] sm:$0xff]  ;;  %v2341_v61 = vld [vmem:[%s3276_s4 + $0x5a] sm:$0xff] }
  0x34   : > { %2628 = vmatprep.mubr.msk.bf16.mxu1 %vm244_vm1, %v241_v50  ;;  %2723 = vmatpush3.bf16.msra.mxu0 %v1471_v52  ;;  %v638_v47 = vpack.c.bf16 %v2335_v44, %v2334_v43  ;;  %v2448_v50 = vld [vmem:[%s3276_s4 + $0x94] sm:$0xff]  ;;  %v2338_v52 = vld [vmem:[%s3276_s4 + $0x42] sm:$0xff]  ;;  %v2371_v37 = vld [vmem:[%s3276_s4 + $0x8a] sm:$0xff] }
  0x35   : > { %2710 = vmatprep.mubr.msk.bf16.mxu0 %vm244_vm1, %v3329_v51  ;;  %2914 = vmatprep.subr.msk.bf16.mxu0 %vm269_vm0, %v2476_v53  ;;  %v2339_v53 = vld [vmem:[%s3276_s4 + $0x4a] sm:$0xff]  ;;  %v2340_v60 = vld [vmem:[%s3276_s4 + $0x52] sm:$0xff]  ;;  %v2345_v11 = vld [vmem:[%s3276_s4 + $0x7a] sm:$0xff] }
  0x36   : > { %v2460_v54 = vld [vmem:[%s3276_s4 + $0x25] sm:$0xff]  ;;  %v2461_v55 = vld [vmem:[%s3276_s4 + $0x2d] sm:$0xff]  ;;  %v640_v58 = vpack.c.bf16 %v2339_v53, %v2338_v52  ;;  %v641_v5 = vpack.c.bf16 %v2341_v61, %v2340_v60  ;;  %v2470_v19 = vld [vmem:[%s3276_s4 + $0x75] sm:$0xff] }
  0x37   : > { %v1636_v59 = vpack.c.bf16 %v2461_v55, %v2460_v54  ;;  %v2465_v4 = vld [vmem:[%s3276_s4 + $0x4d] sm:$0xff]  ;;  %v2471_v20 = vld [vmem:[%s3276_s4 + $0x7d] sm:$0xff]  ;;  %v2472_v21 = vld [vmem:[%s3276_s4 + $0x85] sm:$0xff] }
  0x38   : > { %v2344_v10 = vld [vmem:[%s3276_s4 + $0x72] sm:$0xff]  ;;  %v1641_v23 = vpack.c.bf16 %v2471_v20, %v2470_v19  ;;  %v2486_v27 = vld [vmem:[%s3276_s4 + $0x26] sm:$0xff]  ;;  %v2391_v41 = vld [vmem:[%s3276_s4 + $0x5b] sm:$0xff] }
  0x39   : > { %v2473_v22 = vld [vmem:[%s3276_s4 + $0x8d] sm:$0xff]  ;;  %v2370_v36 = vld [vmem:[%s3276_s4 + $0x82] sm:$0xff]  ;;  %v2492_v38 = vld [vmem:[%s3276_s4 + $0x56] sm:$0xff] }
  0x3a   : > { %v2487_v28 = vld [vmem:[%s3276_s4 + $0x2e] sm:$0xff]  ;;  %v2494_v42 = vld [vmem:[%s3276_s4 + $0x66] sm:$0xff]  ;;  %v843_v44 = vpack.c.bf16 %v2371_v37, %v2370_v36  ;;  %v2395_v53 = vld [vmem:[%s3276_s4 + $0x7b] sm:$0xff] }
  0x3b   : > { %2629 = vmatmul.mubr.msk.bf16.gmra.mrb[12].mxu1 %vm244_vm1, %v242_v62  ;;  %2711 = vmatmul.mubr.msk.bf16.gmra.mrb[4].mxu0 %vm244_vm1, %v1239_v63  ;;  %v2462_v62 = vld [vmem:[%s3276_s4 + $0x35] sm:$0xff]  ;;  %v1836_v30 = vpack.c.bf16 %v2487_v28, %v2486_v27  ;;  %v2498_v54 = vld [vmem:[%s3276_s4 + $0x86] sm:$0xff] }
  0x3c   : > { %2634 = vmatprep.mubr.msk.bf16.mxu1 %vm244_vm1, %v436_v0  ;;  %2714 = vmatprep.mubr.msk.bf16.mxu0 %vm244_vm1, %v1240_v2  ;;  %v2343_v0 = vld [vmem:[%s3276_s4 + $0x6a] sm:$0xff]  ;;  %v2394_v52 = vld [vmem:[%s3276_s4 + $0x73] sm:$0xff] }
  0x3d   : > { %v2495_v43 = vld [vmem:[%s3276_s4 + $0x6e] sm:$0xff]  ;;  %v2396_v60 = vld [vmem:[%s3276_s4 + $0x83] sm:$0xff] }
  0x3e   : > { %v2499_v55 = vld [vmem:[%s3276_s4 + $0x8e] sm:$0xff] }
  0x3f   : > { %v2397_v61 = vld [vmem:[%s3276_s4 + $0x8b] sm:$0xff] }
  0x43   : > { %2635 = vmatmul.mubr.msk.bf16.vlgmr.msra.gmra.mrb[0].mxu1 %vm244_vm1, %v437_v12  ;;  %2715 = vmatmul.mubr.msk.bf16.gmra.mrb[8].mxu0 %vm244_vm1, %v1241_v13  ;;  %v2466_v12 = vld [vmem:[%s3276_s4 + $0x55] sm:$0xff] }
  0x44   : > { %2651 = vmatpush3.bf16.msra.mxu1 %v671_v14  ;;  %2638 = vmatprep.mubr.msk.bf16.mxu1 %vm244_vm1, %v438_v15  ;;  %v2468_v14 = vld [vmem:[%s3276_s4 + $0x65] sm:$0xff]  ;;  %v2469_v15 = vld [vmem:[%s3276_s4 + $0x6d] sm:$0xff] }
  0x45   : > { %2718 = vmatprep.mubr.msk.bf16.mxu0 %vm244_vm1, %v1242_v16  ;;  %2909 = vmatprep.subr.msk.bf16.mxu1 %vm269_vm0, %v2372_v17  ;;  %v1640_v18 = vpack.c.bf16 %v2469_v15, %v2468_v14 }
  0x4b   : > { %2639 = vmatmul.mubr.msk.bf16.gmra.mrb[4].mxu1 %vm244_vm1, %v439_v24  ;;  %2719 = vmatmul.mubr.msk.bf16.gmra.mrb[12].mxu0 %vm244_vm1, %v1243_v25  ;;  %v1642_v24 = vpack.c.bf16 %v2473_v22, %v2472_v21 }
  0x4c   : > { %2642 = vmatprep.mubr.msk.bf16.mxu1 %vm244_vm1, %v440_v26  ;;  %2724 = vmatprep.mubr.msk.bf16.mxu0 %vm244_vm1, %v1237_v49  ;;  %v2337_v49 = vld [vmem:[%s3276_s4 + $0x3a] sm:$0xff] }
  0x4d   : > { %v639_v56 = vpack.c.bf16 %v2337_v49, %v2336_v48  ;;  %v2475_v26 = vld [vmem:[%s3276_s4 + $0x9d] sm:$0xff]  ;;  %v2393_v49 = vld [vmem:[%s3276_s4 + $0x6b] sm:$0xff] }
  0x4e   : > { %v2392_v48 = vld [vmem:[%s3276_s4 + $0x63] sm:$0xff] }
  0x53   : > { %2643 = vmatmul.mubr.msk.bf16.gmra.mrb[8].mxu1 %vm244_vm1, %v441_v31  ;;  %2725 = vmatmul.mubr.msk.bf16.vlgmr.msra.gmra.mrb[0].mxu0 %vm244_vm1, %v3329_v51  ;;  %v2449_v51 = vld [vmem:[%s3276_s4 + $0x9c] sm:$0xff] }
  0x54   : > { %2646 = vmatprep.mubr.msk.bf16.mxu1 %vm244_vm1, %v442_v32  ;;  %2741 = vmatpush3.bf16.msra.mxu0 %v1671_v33  ;;  %v1443_v57 = vpack.c.bf16 %v2449_v51, %v2448_v50  ;;  %v2489_v31 = vld [vmem:[%s3276_s4 + $0x3e] sm:$0xff]  ;;  %v2490_v32 = vld [vmem:[%s3276_s4 + $0x46] sm:$0xff]  ;;  %v2491_v33 = vld [vmem:[%s3276_s4 + $0x4e] sm:$0xff] }
  0x55   : > { %2728 = vmatprep.mubr.msk.bf16.mxu0 %vm244_vm1, %v1239_v63  ;;  %2915 = vmatprep.subr.msk.bf16.mxu0 %vm269_vm0, %v2502_v34  ;;  %v2463_v63 = vld [vmem:[%s3276_s4 + $0x3d] sm:$0xff]  ;;  %v1838_v35 = vpack.c.bf16 %v2491_v33, %v2490_v32 }
  0x56   : > { %v1637_v6 = vpack.c.bf16 %v2463_v63, %v2462_v62  ;;  %v2496_v50 = vld [vmem:[%s3276_s4 + $0x76] sm:$0xff]  ;;  %v2497_v51 = vld [vmem:[%s3276_s4 + $0x7e] sm:$0xff] }
  0x57   : > { %v2500_v62 = vld [vmem:[%s3276_s4 + $0x96] sm:$0xff]  ;;  %v2501_v63 = vld [vmem:[%s3276_s4 + $0x9e] sm:$0xff] }
  0x5b   : > { %2647 = vmatmul.mubr.msk.bf16.gmra.mrb[12].mxu1 %vm244_vm1, %v443_v39  ;;  %2729 = vmatmul.mubr.msk.bf16.gmra.mrb[4].mxu0 %vm244_vm1, %v1240_v2  ;;  %v2464_v2 = vld [vmem:[%s3276_s4 + $0x45] sm:$0xff] }
  0x5c   : > { %2652 = vmatprep.mubr.msk.bf16.mxu1 %vm244_vm1, %v636_v40  ;;  %2732 = vmatprep.mubr.msk.bf16.mxu0 %vm244_vm1, %v1241_v13  ;;  %v1638_v8 = vpack.c.bf16 %v2465_v4, %v2464_v2  ;;  %v2467_v13 = vld [vmem:[%s3276_s4 + $0x5d] sm:$0xff]  ;;  %v2390_v40 = vld [vmem:[%s3276_s4 + $0x53] sm:$0xff] }
  0x5d   : > { %v1639_v17 = vpack.c.bf16 %v2467_v13, %v2466_v12  ;;  %v2493_v39 = vld [vmem:[%s3276_s4 + $0x5e] sm:$0xff] }
  0x5e   : > { %v3507_v12 = vld [vmem:[%s3676_s2] ss:$0 sm:$0xff] }
  0x63   : > { %2653 = vmatmul.mubr.msk.bf16.vlgmr.msra.gmra.mrb[0].mxu1 %vm244_vm1, %v637_v45  ;;  %2733 = vmatmul.mubr.msk.bf16.gmra.mrb[8].mxu0 %vm244_vm1, %v1242_v16  ;;  %v643_v16 = vpack.c.bf16 %v2345_v11, %v2344_v10 }
  0x64   : > { %2669 = vmatpush3.bf16.msra.mxu1 %v871_v46  ;;  %2656 = vmatprep.mubr.msk.bf16.mxu1 %vm244_vm1, %v638_v47  ;;  %v1040_v46 = vpack.c.bf16 %v2391_v41, %v2390_v40 }
  0x65   : > { %2736 = vmatprep.mubr.msk.bf16.mxu0 %vm244_vm1, %v1243_v25  ;;  %2911 = vmatprep.subr.msk.bf16.mxu1 %vm269_vm0, %v3251_v1  ;;  %v2342_v1 = vld [vmem:[%s3276_s4 + $0x62] sm:$0xff]  ;;  %v2474_v25 = vld [vmem:[%s3276_s4 + $0x95] sm:$0xff] }
  0x66   : > { %v642_v7 = vpack.c.bf16 %v2343_v0, %v2342_v1  ;;  %v1643_v29 = vpack.c.bf16 %v2475_v26, %v2474_v25  ;;  %v1043_v1 = vpack.c.bf16 %v2397_v61, %v2396_v60  ;;  %v1843_v0 = vpack.c.bf16 %v2501_v63, %v2500_v62 }
  0x6b   : > { %2657 = vmatmul.mubr.msk.bf16.gmra.mrb[4].mxu1 %vm244_vm1, %v639_v56  ;;  %2737 = vmatmul.mubr.msk.bf16.gmra.mrb[12].mxu0 %vm244_vm1, %v1443_v57  ;;  %v1841_v57 = vpack.c.bf16 %v2497_v51, %v2496_v50 }
  0x6c   : > { %2660 = vmatprep.mubr.msk.bf16.mxu1 %vm244_vm1, %v640_v58  ;;  %2742 = vmatprep.mubr.msk.bf16.mxu0 %vm244_vm1, %v1636_v59  ;;  %v1842_v59 = vpack.c.bf16 %v2499_v55, %v2498_v54 }
  0x73   : > { %2661 = vmatmul.mubr.msk.bf16.gmra.mrb[8].mxu1 %vm244_vm1, %v641_v5  ;;  %2743 = vmatmul.mubr.msk.bf16.vlgmr.msra.gmra.mrb[0].mxu0 %vm244_vm1, %v1637_v6 }
  0x74   : > { %2664 = vmatprep.mubr.msk.bf16.mxu1 %vm244_vm1, %v642_v7  ;;  %2759 = vmatpush3.bf16.msra.mxu0 %v1871_v9 }
  0x75   : > { %2746 = vmatprep.mubr.msk.bf16.mxu0 %vm244_vm1, %v1638_v8 }
  0x7b   : > { %2665 = vmatmul.mubr.msk.bf16.gmra.mrb[12].mxu1 %vm244_vm1, %v643_v16  ;;  %2747 = vmatmul.mubr.msk.bf16.gmra.mrb[4].mxu0 %vm244_vm1, %v1639_v17 }
  0x7c   : > { %2670 = vmatprep.mubr.msk.bf16.mxu1 %vm244_vm1, %v637_v45  ;;  %2750 = vmatprep.mubr.msk.bf16.mxu0 %vm244_vm1, %v1640_v18  ;;  %v1839_v45 = vpack.c.bf16 %v2493_v39, %v2492_v38 }
  0x83   : > { %2671 = vmatmul.mubr.msk.bf16.vlgmr.msra.gmra.mrb[0].mxu1 %vm244_vm1, %v638_v47  ;;  %2751 = vmatmul.mubr.msk.bf16.gmra.mrb[8].mxu0 %vm244_vm1, %v1641_v23  ;;  %v1840_v47 = vpack.c.bf16 %v2495_v43, %v2494_v42 }
  0x84   : > { %2777 = vmatpush3.bf16.msra.mxu1 %v3260_v3  ;;  %2674 = vmatprep.mubr.msk.bf16.mxu1 %vm244_vm1, %v639_v56  ;;  %v2488_v3 = vld [vmem:[%s3276_s4 + $0x36] sm:$0xff]  ;;  %v1041_v56 = vpack.c.bf16 %v2393_v49, %v2392_v48  ;;  %s2292_s4 = sshll.u32 %s175_s29, 7 }
  0x85   : > { %2754 = vmatprep.mubr.msk.bf16.mxu0 %vm244_vm1, %v1642_v24  ;;  %v1837_v34 = vpack.c.bf16 %v2489_v31, %v2488_v3  ;;  %s3578_s5 = scalar_lea.vmem [#allocation3], %s2292_s4 }
  0x86   : > { %s2185_s9 = sshll.u32 %s3578_s5, 4  ;;  %s3614_s9 = int_to_ptr.vmem [resolvable:$true] %s2185_s9 }
  0x87   : > { %s3055_s21 = scalar_lea.vmem %s3614_s9, 2048  ;;  %p3062_p2 = scmp.lt.s32.totalorder %s3614_s9, %s3060_s27 }
  0x88   : > { %p3056_p13 = scmp.ne.s32.totalorder %s3614_s9, %s3055_s21  ;;  %p3063_p4 = scmp.lt.s32.totalorder %s3061_s28, %s3055_s21 }
  0x8a   : > { %p3057_p0 = pnand %p3056_p13, %p3225_p3  ;;  %p3064_p5 = por %p3063_p4, %p3062_p2 }
  0x8b   : > { %2675 = vmatmul.mubr.msk.bf16.gmra.mrb[4].mxu1 %vm244_vm1, %v640_v58  ;;  %2755 = vmatmul.mubr.msk.bf16.gmra.mrb[12].mxu0 %vm244_vm1, %v1643_v29  ;;  %v1042_v58 = vpack.c.bf16 %v2395_v53, %v2394_v52 }
  0x8c   : > { %2678 = vmatprep.mubr.msk.bf16.mxu1 %vm244_vm1, %v641_v5  ;;  %2760 = vmatprep.mubr.msk.bf16.mxu0 %vm244_vm1, %v1836_v30  ;;  %p3058_p1 = pneg %p3057_p0 }
  0x8e   : > { %p3065_p6 = pnand %p3064_p5, %p3058_p1 }
  0x93   : > { %2679 = vmatmul.mubr.msk.bf16.gmra.mrb[8].mxu1 %vm244_vm1, %v642_v7  ;;  %2761 = vmatmul.mubr.msk.bf16.vlgmr.msra.gmra.mrb[0].mxu0 %vm244_vm1, %v1837_v34 }
  0x94   : > { %2682 = vmatprep.mubr.msk.bf16.mxu1 %vm244_vm1, %v643_v16  ;;  %2764 = vmatprep.mubr.msk.bf16.mxu0 %vm244_vm1, %v1838_v35 }
  0x9b   : > { %2683 = vmatmul.mubr.msk.bf16.gmra.mrb[12].mxu1 %vm244_vm1, %v843_v44  ;;  %2765 = vmatmul.mubr.msk.bf16.gmra.mrb[4].mxu0 %vm244_vm1, %v1839_v45 }
  0x9c   : > { %2696 = vmatprep.mubr.msk.bf16.mxu1 %vm244_vm1, %v1040_v46  ;;  %2768 = vmatprep.mubr.msk.bf16.mxu0 %vm244_vm1, %v1840_v47 }
  0xa3   : > { %2697 = vmatmul.mubr.msk.bf16.vlgmr.msra.gmra.mrb[8].mxu1 %vm244_vm1, %v1041_v56  ;;  %2769 = vmatmul.mubr.msk.bf16.gmra.mrb[8].mxu0 %vm244_vm1, %v1841_v57 }
  0xa4   : > { %2700 = vmatprep.mubr.msk.bf16.mxu1 %vm244_vm1, %v1042_v58  ;;  %2772 = vmatprep.mubr.msk.bf16.mxu0 %vm244_vm1, %v1842_v59 }
  0xab   : > { %2701 = vmatmul.mubr.msk.bf16.gmra.mrb[12].mxu1 %vm244_vm1, %v1043_v1  ;;  %2773 = vmatmul.mubr.msk.bf16.gmra.mrb[12].mxu0 %vm244_vm1, %v1843_v0 }
 0x156   : > { %v2672_v2 = vpop.f32.mrb[0].mxu1 }
 0x157   : > { %v907_v4 = vpop.f32.mrb[1].mxu1 }
 0x158   : > { %v2673_v5 = vpop.f32.mrb[2].mxu1 }
 0x159   : > { %v910_v6 = vpop.f32.mrb[3].mxu1 }
 0x15e   : > { %v2676_v7 = vpop.f32.mrb[4].mxu1 }
 0x15f   : > { %v923_v8 = vpop.f32.mrb[5].mxu1 }
 0x160   : > { %v2677_v9 = vpop.f32.mrb[6].mxu1 }
 0x161   : > { %v926_v10 = vpop.f32.mrb[7].mxu1 }
 0x166   : > { %v2762_v11 = vpop.f32.mrb[0].mxu0 }
 0x167   : > { %v2778_v13 = vadd.f32 %v2762_v11, %v2672_v2  ;;  %v1907_v14 = vpop.f32.mrb[1].mxu0 }
 0x168   : > { %v2779_v15 = vadd.f32 %v1907_v14, %v907_v4  ;;  %v2763_v16 = vpop.f32.mrb[2].mxu0 }
 0x169   : > { %v3510_v17 = vadd.f32 %v2778_v13, %v3507_v12  ;;  %v2780_v18 = vadd.f32 %v2763_v16, %v2673_v5  ;;  %v1910_v19 = vpop.f32.mrb[3].mxu0 }
 0x16a   : > { %v3513_v20 = vadd.f32 %v2779_v15, %v3507_v12  ;;  %v2781_v21 = vadd.f32 %v1910_v19, %v910_v6 }
 0x16b   : > { %v2514_v22 = vmul.f32 -1.442695, %v3510_v17  ;;  %v3517_v23 = vadd.f32 %v2780_v18, %v3507_v12 }
 0x16c   : > { %v2512_v24 = vmul.f32 -1.442695, %v3513_v20  ;;  %v3521_v25 = vadd.f32 %v2781_v21, %v3507_v12 }
 0x16d   : > { %2991 = vpow2.f32 %v2514_v22  ;;  %v2515_v26 = vmul.f32 -1.442695, %v3517_v23 }
 0x16e   : > { %2993 = vpow2.f32 %v2512_v24  ;;  %v2513_v27 = vmul.f32 -1.442695, %v3521_v25  ;;  %v2766_v28 = vpop.f32.mrb[4].mxu0 }
 0x16f   : > { %2995 = vpow2.f32 %v2515_v26  ;;  %v2782_v29 = vadd.f32 %v2766_v28, %v2676_v7  ;;  %v1923_v30 = vpop.f32.mrb[5].mxu0 }
 0x170   : > { %2997 = vpow2.f32 %v2513_v27  ;;  %v2783_v3 = vadd.f32 %v1923_v30, %v923_v8  ;;  %v2767_v31 = vpop.f32.mrb[6].mxu0 }
 0x171   : > { %v3526_v32 = vadd.f32 %v2782_v29, %v3507_v12  ;;  %v2784_v33 = vadd.f32 %v2767_v31, %v2677_v9  ;;  %v1926_v34 = vpop.f32.mrb[7].mxu0 }
 0x172   : > { %v3529_v35 = vadd.f32 %v2783_v3, %v3507_v12  ;;  %v2785_v36 = vadd.f32 %v1926_v34, %v926_v10 }
 0x173   : > { %v2518_v37 = vmul.f32 -1.442695, %v3526_v32  ;;  %v3533_v38 = vadd.f32 %v2784_v33, %v3507_v12 }
 0x174   : > { %v2516_v39 = vmul.f32 -1.442695, %v3529_v35  ;;  %v3537_v40 = vadd.f32 %v2785_v36, %v3507_v12 }
 0x175   : > { %2999 = vpow2.f32 %v2518_v37  ;;  %v2519_v41 = vmul.f32 -1.442695, %v3533_v38 }
 0x176   : > { %v2698_v42 = vpop.f32.mrb[8].mxu1  ;;  %3001 = vpow2.f32 %v2516_v39  ;;  %v2517_v43 = vmul.f32 -1.442695, %v3537_v40  ;;  %v2770_v44 = vpop.f32.mrb[8].mxu0 }
 0x177   : > { %v1139_v45 = vpop.f32.mrb[9].mxu1  ;;  %v2992_v46 = vpop.eup %2991  ;;  %3003 = vpow2.f32 %v2519_v41  ;;  %v2786_v47 = vadd.f32 %v2770_v44, %v2698_v42 }
 0x178   : > { %v1939_v48 = vpop.f32.mrb[9].mxu0  ;;  %v2699_v49 = vpop.f32.mrb[10].mxu1  ;;  %v2091_v51 = vadd.f32 1.0, %v2992_v46  ;;  %3005 = vpow2.f32 %v2517_v43 }
 0x179   : > { %v2994_v50 = vpop.eup %2993  ;;  %v2787_v52 = vadd.f32 %v1939_v48, %v1139_v45  ;;  %v2771_v53 = vpop.f32.mrb[10].mxu0  ;;  %v3542_v57 = vadd.f32 %v2786_v47, %v3507_v12 }
 0x17a   : > { %v1142_v54 = vpop.f32.mrb[11].mxu1  ;;  %v2996_v55 = vpop.eup %2995  ;;  %v2089_v56 = vadd.f32 1.0, %v2994_v50  ;;  %v2788_v58 = vadd.f32 %v2771_v53, %v2699_v49  ;;  %3007 = vrcp.f32 %v2091_v51 }
 0x17b   : > { %v1942_v59 = vpop.f32.mrb[11].mxu0  ;;  %v2998_v60 = vpop.eup %2997  ;;  %v2092_v61 = vadd.f32 1.0, %v2996_v55  ;;  %v3545_v62 = vadd.f32 %v2787_v52, %v3507_v12  ;;  %v2522_v0 = vmul.f32 -1.442695, %v3542_v57 }
 0x17c   : > { %v2789_v63 = vadd.f32 %v1942_v59, %v1142_v54  ;;  %3009 = vrcp.f32 %v2089_v56  ;;  %v2090_v1 = vadd.f32 1.0, %v2998_v60  ;;  %v3549_v2 = vadd.f32 %v2788_v58, %v3507_v12 }
 0x17d   : > { %3011 = vrcp.f32 %v2092_v61  ;;  %v2520_v4 = vmul.f32 -1.442695, %v3545_v62 }
 0x17e   : > { %v3553_v5 = vadd.f32 %v2789_v63, %v3507_v12  ;;  %3013 = vrcp.f32 %v2090_v1  ;;  %v2523_v6 = vmul.f32 -1.442695, %v3549_v2  ;;  %v2702_v7 = vpop.f32.mrb[12].mxu1  ;;  %v2774_v9 = vpop.f32.mrb[12].mxu0 }
 0x17f   : > { %3015 = vpow2.f32 %v2522_v0  ;;  %v1155_v10 = vpop.f32.mrb[13].mxu1  ;;  %v3000_v11 = vpop.eup %2999  ;;  %v2790_v13 = vadd.f32 %v2774_v9, %v2702_v7 }
 0x180   : > { %v2521_v8 = vmul.f32 -1.442695, %v3553_v5  ;;  %3017 = vpow2.f32 %v2520_v4  ;;  %v1955_v14 = vpop.f32.mrb[13].mxu0  ;;  %v2703_v15 = vpop.f32.mrb[14].mxu1  ;;  %v2095_v18 = vadd.f32 1.0, %v3000_v11 }
 0x181   : > { %v3002_v16 = vpop.eup %3001  ;;  %3019 = vpow2.f32 %v2523_v6  ;;  %v2791_v19 = vadd.f32 %v1955_v14, %v1155_v10  ;;  %v2775_v21 = vpop.f32.mrb[14].mxu0  ;;  %v3561_v27 = vadd.f32 %v2790_v13, %v3507_v12 }
 0x182   : > { %v1158_v22 = vpop.f32.mrb[15].mxu1  ;;  %v3004_v24 = vpop.eup %3003  ;;  %v2093_v26 = vadd.f32 1.0, %v3002_v16  ;;  %3021 = vpow2.f32 %v2521_v8  ;;  %v2792_v28 = vadd.f32 %v2775_v21, %v2703_v15 }
 0x183   : > { %v1958_v29 = vpop.f32.mrb[15].mxu0  ;;  %v3006_v30 = vpop.eup %3005  ;;  %3023 = vrcp.f32 %v2095_v18  ;;  %v2096_v3 = vadd.f32 1.0, %v3004_v24  ;;  %v3564_v31 = vadd.f32 %v2791_v19, %v3507_v12  ;;  %v2526_v36 = vmul.f32 -1.442695, %v3561_v27 }
 0x184   : > { %v2793_v33 = vadd.f32 %v1958_v29, %v1158_v22  ;;  %3025 = vrcp.f32 %v2093_v26  ;;  %v2094_v34 = vadd.f32 1.0, %v3006_v30  ;;  %v3568_v37 = vadd.f32 %v2792_v28, %v3507_v12  ;;  %v3008_v39 = vpop.eup %3007 }
 0x185   : > { %3027 = vrcp.f32 %v2096_v3  ;;  %v2524_v41 = vmul.f32 -1.442695, %v3564_v31  ;;  %v2139_v44 = vmul.f32 %v3008_v39, %v3510_v17 }
 0x186   : > { %v3572_v42 = vadd.f32 %v2793_v33, %v3507_v12  ;;  %v3010_v43 = vpop.eup %3009  ;;  %3029 = vrcp.f32 %v2094_v34  ;;  %v2527_v45 = vmul.f32 -1.442695, %v3568_v37 }
 0x187   : > { %v3012_v46 = vpop.eup %3011  ;;  %v2137_v47 = vmul.f32 %v3010_v43, %v3513_v20  ;;  %3031 = vpow2.f32 %v2526_v36  ;;  %2155 = vst [vmem:[%s3578_s5 + $0x10] sm:$0xff] %v2139_v44 }
 0x188   : > { %v2525_v48 = vmul.f32 -1.442695, %v3572_v42  ;;  %v3014_v49 = vpop.eup %3013  ;;  %v2140_v12 = vmul.f32 %v3012_v46, %v3517_v23  ;;  %3033 = vpow2.f32 %v2524_v41 }
 0x189   : > { %v3016_v17 = vpop.eup %3015  ;;  %2153 = vst [vmem:[%s3578_s5] sm:$0xff] %v2137_v47  ;;  %v2138_v50 = vmul.f32 %v3014_v49, %v3521_v25  ;;  %3035 = vpow2.f32 %v2527_v45 }
 0x18a   : > { %v3018_v20 = vpop.eup %3017  ;;  %2156 = vst [vmem:[%s3578_s5 + $0x18] sm:$0xff] %v2140_v12  ;;  %v2099_v51 = vadd.f32 1.0, %v3016_v17  ;;  %3037 = vpow2.f32 %v2525_v48 }
 0x18b   : > { %v3020_v52 = vpop.eup %3019  ;;  %2154 = vst [vmem:[%s3578_s5 + $0x8] sm:$0xff] %v2138_v50  ;;  %v2097_v53 = vadd.f32 1.0, %v3018_v20 }
 0x18c   : > { %v3022_v54 = vpop.eup %3021  ;;  %3039 = vrcp.f32 %v2099_v51  ;;  %v2100_v55 = vadd.f32 1.0, %v3020_v52 }
 0x18d   : > { %v3024_v56 = vpop.eup %3023  ;;  %3041 = vrcp.f32 %v2097_v53  ;;  %v2098_v23 = vadd.f32 1.0, %v3022_v54 }
 0x18e   : > { %v3026_v58 = vpop.eup %3025  ;;  %v2143_v25 = vmul.f32 %v3024_v56, %v3526_v32  ;;  %3043 = vrcp.f32 %v2100_v55 }
 0x18f   : > { %v3028_v59 = vpop.eup %3027  ;;  %v2141_v60 = vmul.f32 %v3026_v58, %v3529_v35  ;;  %3045 = vrcp.f32 %v2098_v23 }
 0x190   : > { %v3030_v61 = vpop.eup %3029  ;;  %2159 = vst [vmem:[%s3578_s5 + $0x30] sm:$0xff] %v2143_v25  ;;  %v2144_v63 = vmul.f32 %v3028_v59, %v3533_v38 }
 0x191   : > { %v3032_v1 = vpop.eup %3031  ;;  %2157 = vst [vmem:[%s3578_s5 + $0x20] sm:$0xff] %v2141_v60  ;;  %v2142_v0 = vmul.f32 %v3030_v61, %v3537_v40 }
 0x192   : > { %v3034_v4 = vpop.eup %3033  ;;  %2160 = vst [vmem:[%s3578_s5 + $0x38] sm:$0xff] %v2144_v63  ;;  %v2103_v6 = vadd.f32 1.0, %v3032_v1 }
 0x193   : > { %v3036_v7 = vpop.eup %3035  ;;  %2158 = vst [vmem:[%s3578_s5 + $0x28] sm:$0xff] %v2142_v0  ;;  %v2101_v32 = vadd.f32 1.0, %v3034_v4 }
 0x194   : > { %v3038_v8 = vpop.eup %3037  ;;  %3047 = vrcp.f32 %v2103_v6  ;;  %v2104_v35 = vadd.f32 1.0, %v3036_v7 }
 0x195   : > { %3049 = vrcp.f32 %v2101_v32  ;;  %v2102_v38 = vadd.f32 1.0, %v3038_v8 }
 0x196   : > { %v3040_v9 = vpop.eup %3039  ;;  %3051 = vrcp.f32 %v2104_v35 }
 0x197   : > { %v3042_v40 = vpop.eup %3041  ;;  %v2147_v10 = vmul.f32 %v3040_v9, %v3542_v57  ;;  %3053 = vrcp.f32 %v2102_v38 }
 0x198   : > { %v3044_v11 = vpop.eup %3043  ;;  %v2145_v13 = vmul.f32 %v3042_v40, %v3545_v62 }
 0x199   : > { %v3046_v14 = vpop.eup %3045  ;;  %2163 = vst [vmem:[%s3578_s5 + $0x50] sm:$0xff] %v2147_v10  ;;  %v2148_v15 = vmul.f32 %v3044_v11, %v3549_v2 }
 0x19a   : > { %2161 = vst [vmem:[%s3578_s5 + $0x40] sm:$0xff] %v2145_v13  ;;  %v2146_v16 = vmul.f32 %v3046_v14, %v3553_v5 }
 0x19b   : > { %2164 = vst [vmem:[%s3578_s5 + $0x58] sm:$0xff] %v2148_v15 }
 0x19c   : > { %2162 = vst [vmem:[%s3578_s5 + $0x48] sm:$0xff] %v2146_v16 }
 0x19e   : > { %v3048_v57 = vpop.eup %3047 }
 0x19f   : > { %v3050_v62 = vpop.eup %3049  ;;  %v2151_v18 = vmul.f32 %v3048_v57, %v3561_v27 }
 0x1a0   : > { %v3052_v19 = vpop.eup %3051  ;;  %v2149_v2 = vmul.f32 %v3050_v62, %v3564_v31 }
 0x1a1   : > { %v3054_v21 = vpop.eup %3053  ;;  %2167 = vst [vmem:[%s3578_s5 + $0x70] sm:$0xff] %v2151_v18  ;;  %v2152_v5 = vmul.f32 %v3052_v19, %v3568_v37 }
 0x1a2   : > { %2165 = vst [vmem:[%s3578_s5 + $0x60] sm:$0xff] %v2149_v2  ;;  %v2150_v22 = vmul.f32 %v3054_v21, %v3572_v42 }
 0x1a3   : > { %2168 = vst [vmem:[%s3578_s5 + $0x78] sm:$0xff] %v2152_v5 }
 0x1a4   : > { %2166 = vst [vmem:[%s3578_s5 + $0x68] sm:$0xff] %v2150_v22 }
 0x1a5   : > { %3068 = shalt.err (!%p3065_p6)
}
 0x1a6   : > { %s3069_s29 = scalar_lea.hbm %s3612_s11, 2048  ;;  %s3073_s6 = scalar_lea.hbm %s3677_s3, 12288 }
 0x1a7   : > { %p3070_p7 = scmp.ne.s32.totalorder %s3612_s11, %s3069_s29  ;;  %p3074_p11 = scmp.lt.u32.totalorder %s3612_s11, %s3677_s3 }
 0x1a8   : > { %p3075_p12 = scmp.lt.u32.totalorder %s3073_s6, %s3069_s29  ;;  %p3077_p0 = scmp.lt.u32.totalorder %s3069_s29, %s3612_s11 }
 0x1a9   : > { %p3071_p9 = pnand %p3070_p7, %p3225_p3 }
 0x1aa   : > { %p3076_p13 = por %p3075_p12, %p3074_p11 }
 0x1ab   : > { %p3072_p10 = pneg %p3071_p9 }
 0x1ac   : > { %p3078_p1 = por %p3077_p0, %p3076_p13 }
 0x1ae   : > { %p3079_p2 = pnand %p3078_p1, %p3072_p10 }
 0x1b0   : > { %3082 = shalt.err (!%p3079_p2)
}
 0x1b1   : > { %s3152_s16 = smov 128   ;;  %s3153_s15 = smov 8  }
 0x1b2   : > { %2918 = dma.vmem_to_hbm [thread:$0]  (%p3225_p3), %s3614_s9, 2048, %s3612_s11, %s3622_s20, %s3152_s16, %s3152_s16, %s3153_s15  }
 0x1b3 PF: > { %p2924_p4 = scmp.ge.s32.totalorder %s3149_s19, 2  ;;  %s2200_s10 = sand.u32 1, %s3121_s12  }
 0x1b4   : > { %s2201_s21 = scalar_lea.sflag [#allocation4], %s2200_s10 }
 0x1b5   : > { %p2921_p5 = pnand %p2924_p4, %p3234_p8 }
 0x1b7   : > { %3116 = dma.done.wait (!%p2921_p5), %s2201_s21, 2048  }
 0x1b8   : > { %3118 = vsyncadd (!%p2921_p5), %s2201_s21, 4294965248  ;;  %s16_s19 = sadd.s32 1, %s3149_s19   ;;  %s3680_s12 = smov %s3125_s13 }
 0x1b9   : > { %p13_p6 = scmp.ge.s32.totalorder %s16_s19, 8   ;;  %s3681_s13 = smov %s3129_s14 }
 0x1ba   : > { %s3682_s14 = smov %s3243_s30  ;;  %s3683_s15 = smov %s3141_s17 }
 0x1bb   : > { %s3684_s16 = smov %s3145_s18  ;;  %s3685_s17 = smov %s3688_s22 }
 0x1bc   : > { %s3686_s18 = smov %s3692_s23  ;;  %15 = sbr.rel (!%p13_p6) target bundleno = 5 (0x5), region = 84 }
 0x1c3   :  { %2206 = vsyncpa [#allocation4], 1 }
 0x1c4   :  { %2208 = vsyncpa [#allocation4 + $0x1], 1 }

</bundles_post_ra>
